<compile_context>
chip_gen: v7x
topology: tpu7x:2x2x1
jax: 0.10.0
libtpu: 0.0.40
codegen_flags: <defaults>
</compile_context>

<pallas_src>
import jax
import jax.numpy as jnp
from jax.experimental import pallas as pl
from jax.experimental.pallas import tpu as pltpu


def trunk_kernel(x_ref,
                 w1_ref, b1_ref,
                 w2_ref, b2_ref,
                 w3_ref, b3_ref,
                 w4_ref, b4_ref,
                 w5t_ref, b5_ref,
                 o_ref):
    # Transposed layout: activations are (features, B_tile), batch on lanes.
    x = x_ref[...]                               # (in_size, B)
    in_size = x_ref.shape[0]

    # --- fc1: contraction dim (input_size, typically 2) is far too small for
    #     the MXU -> statically unrolled broadcast FMAs on the VPU.
    if in_size <= 8:
        w1 = w1_ref[...]                         # (H, in_size)
        acc = w1[:, 0:1] * x[0:1, :]             # (H,1)*(1,B) -> (H,B)
        for k in range(1, in_size):
            acc = acc + w1[:, k:k + 1] * x[k:k + 1, :]
        h = jnp.tanh(acc + b1_ref[...])
    else:
        h = jnp.tanh(jnp.dot(w1_ref[...], x,
                             preferred_element_type=jnp.float32) + b1_ref[...])

    # --- fc2..fc4: MXU matmuls; output lanes fully populated by the batch.
    h = jnp.tanh(jnp.dot(w2_ref[...], h, preferred_element_type=jnp.float32)
                 + b2_ref[...])
    h = jnp.tanh(jnp.dot(w3_ref[...], h, preferred_element_type=jnp.float32)
                 + b3_ref[...])
    h = jnp.tanh(jnp.dot(w4_ref[...], h, preferred_element_type=jnp.float32)
                 + b4_ref[...])

    # --- fc5: output width 1 -> column-broadcast multiply + sublane reduce
    #     (keeps the 1-wide matmul off the MXU); lane-dense (1, B_tile) store.
    y = jnp.sum(w5t_ref[...] * h, axis=0, keepdims=True) + b5_ref[...]  # (1,B)
    o_ref[...] = y.astype(o_ref.dtype)


def trunk_network(x, params, *, tile_b=512):
    """x: (N, input_size) f32.
       params: list of (W, b) in PyTorch layout: W (out, in), b (out,)."""
    N, in_size = x.shape
    out_size = params[-1][0].shape[0]

    # Lane-dense batch tiles: multiple of 128, no larger than the padded batch.
    tile_b = max(128, (tile_b // 128) * 128)
    n_pad = pl.cdiv(N, 128) * 128
    tile_b = min(tile_b, n_pad)
    n_pad = pl.cdiv(N, tile_b) * tile_b

    # Batch-on-lanes: transpose x; pad only if the batch is not tile-aligned.
    xT = x.T
    if n_pad != N:
        xT = jnp.pad(xT, ((0, 0), (0, n_pad - N)))

    (w1, b1), (w2, b2), (w3, b3), (w4, b4), (w5, b5) = params
    # Last-layer weight passed transposed ((in, 1)) so the kernel can do a
    # column-broadcast multiply + sublane reduce; biases become (out, 1).
    flat = [w1, b1[:, None], w2, b2[:, None], w3, b3[:, None],
            w4, b4[:, None], w5.T, b5[:, None]]

    # Full-array, VMEM-resident specs; constant index_map -> DMA'd once.
    param_specs = [pl.BlockSpec(p.shape, lambda i: (0, 0)) for p in flat]

    # Advisory cost hint so XLA schedules around the custom call sensibly.
    dims = [w1.shape[1], w1.shape[0], w2.shape[0], w3.shape[0], w4.shape[0],
            w5.shape[0]]
    flops = 2 * n_pad * sum(dims[i] * dims[i + 1] for i in range(len(dims) - 1))
    transcendentals = n_pad * sum(dims[1:-1])
    bytes_accessed = 4 * (xT.size + sum(p.size for p in flat) + out_size * n_pad)

    out = pl.pallas_call(
        trunk_kernel,
        out_shape=jax.ShapeDtypeStruct((out_size, n_pad), x.dtype),
        grid_spec=pltpu.PrefetchScalarGridSpec(
            num_scalar_prefetch=0,
            grid=(n_pad // tile_b,),
            in_specs=[pl.BlockSpec((in_size, tile_b), lambda i: (0, i))]
                     + param_specs,
            out_specs=pl.BlockSpec((out_size, tile_b), lambda i: (0, i)),
        ),
        compiler_params=pltpu.CompilerParams(
            dimension_semantics=("parallel",)),
        cost_estimate=pl.CostEstimate(flops=flops,
                                      transcendentals=transcendentals,
                                      bytes_accessed=bytes_accessed),
    )(xT, *flat)

    return out[:, :N].T          # back to (N, out_size)


def init_params(key, input_size, hidden_size, output_size):
    """Deterministic synthetic init in PyTorch nn.Linear layout: W (out, in)."""
    dims = [input_size,
            hidden_size,
            hidden_size // 2,
            hidden_size // 4,
            hidden_size // 8,
            output_size]
    params = []
    for i in range(len(dims) - 1):
        key, kw, kb = jax.random.split(key, 3)
        bound = 1.0 / (dims[i] ** 0.5)
        w = jax.random.uniform(kw, (dims[i + 1], dims[i]),
                               dtype=jnp.float32, minval=-bound, maxval=bound)
        b = jax.random.uniform(kb, (dims[i + 1],),
                               dtype=jnp.float32, minval=-bound, maxval=bound)
        params.append((w, b))
    return params


def trunk_network_ref(x, params):
    """Plain-JAX reference matching the PyTorch forward."""
    h = x
    for (w, b) in params[:-1]:
        h = jnp.tanh(h @ w.T + b)
    w, b = params[-1]
    return h @ w.T + b


if __name__ == "__main__":
    input_size = 2       # trunk input: spatial coordinates
    hidden_size = 64
    output_size = 1
    N = 512              # query points -> 2 lane-dense 256-wide batch tiles
    tile_b = 256

    key = jax.random.PRNGKey(0)
    key, kx = jax.random.split(key)
    x = jax.random.normal(kx, (N, input_size), dtype=jnp.float32)

    params = init_params(key, input_size, hidden_size, output_size)

    out = trunk_network(x, params, tile_b=tile_b)
    out = jax.block_until_ready(out)

    ref = trunk_network_ref(x, params)
    assert out.shape == (N, output_size)
    assert jnp.allclose(out, ref, atol=1e-5, rtol=1e-5), "mismatch vs reference"

    print("KERNEL_OK")
</pallas_src>

<mosaic_0001>
module attributes {stable_mosaic.version = 11 : i64} {
  func.func @trunk_kernel(%arg0: i32, %arg1: memref<2x256xf32, #tpu.memory_space<vmem>>, %arg2: memref<64x2xf32, #tpu.memory_space<vmem>>, %arg3: memref<64x1xf32, #tpu.memory_space<vmem>>, %arg4: memref<32x64xf32, #tpu.memory_space<vmem>>, %arg5: memref<32x1xf32, #tpu.memory_space<vmem>>, %arg6: memref<16x32xf32, #tpu.memory_space<vmem>>, %arg7: memref<16x1xf32, #tpu.memory_space<vmem>>, %arg8: memref<8x16xf32, #tpu.memory_space<vmem>>, %arg9: memref<8x1xf32, #tpu.memory_space<vmem>>, %arg10: memref<8x1xf32, #tpu.memory_space<vmem>>, %arg11: memref<1x1xf32, #tpu.memory_space<vmem>>, %arg12: memref<1x256xf32, #tpu.memory_space<vmem>>) attributes {dimension_semantics = [#tpu.dimension_semantics<parallel>], iteration_bounds = array<i64: 2>, scalar_prefetch = 0 : i64, scratch_operands = 0 : i64, tpu.core_type = #tpu.core_type<tc>, window_params = [{transform_indices = @transform_0, window_bounds = array<i64: 2, 256>}, {pipeline_mode = #tpu.pipeline_mode<synchronous>, transform_indices = @transform_1, window_bounds = array<i64: 64, 2>}, {pipeline_mode = #tpu.pipeline_mode<synchronous>, transform_indices = @transform_2, window_bounds = array<i64: 64, 1>}, {pipeline_mode = #tpu.pipeline_mode<synchronous>, transform_indices = @transform_3, window_bounds = array<i64: 32, 64>}, {pipeline_mode = #tpu.pipeline_mode<synchronous>, transform_indices = @transform_4, window_bounds = array<i64: 32, 1>}, {pipeline_mode = #tpu.pipeline_mode<synchronous>, transform_indices = @transform_5, window_bounds = array<i64: 16, 32>}, {pipeline_mode = #tpu.pipeline_mode<synchronous>, transform_indices = @transform_6, window_bounds = array<i64: 16, 1>}, {pipeline_mode = #tpu.pipeline_mode<synchronous>, transform_indices = @transform_7, window_bounds = array<i64: 8, 16>}, {pipeline_mode = #tpu.pipeline_mode<synchronous>, transform_indices = @transform_8, window_bounds = array<i64: 8, 1>}, {pipeline_mode = #tpu.pipeline_mode<synchronous>, transform_indices = @transform_9, window_bounds = array<i64: 8, 1>}, {pipeline_mode = #tpu.pipeline_mode<synchronous>, transform_indices = @transform_10, window_bounds = array<i64: 1, 1>}, {transform_indices = @transform_11, window_bounds = array<i64: 1, 256>}]} {
    %c0 = arith.constant 0 : index
    %c0_0 = arith.constant 0 : index
    %0 = vector.load %arg1[%c0, %c0_0] : memref<2x256xf32, #tpu.memory_space<vmem>>, vector<2x256xf32>
    %c0_1 = arith.constant 0 : index
    %c0_2 = arith.constant 0 : index
    %1 = vector.load %arg2[%c0_1, %c0_2] : memref<64x2xf32, #tpu.memory_space<vmem>>, vector<64x2xf32>
    %2 = vector.extract_strided_slice %1 {offsets = [0, 0], sizes = [64, 1], strides = [1, 1]} : vector<64x2xf32> to vector<64x1xf32>
    %3 = vector.extract_strided_slice %0 {offsets = [0, 0], sizes = [1, 256], strides = [1, 1]} : vector<2x256xf32> to vector<1x256xf32>
    %4 = vector.broadcast %2 : vector<64x1xf32> to vector<64x256xf32>
    %5 = vector.broadcast %3 : vector<1x256xf32> to vector<64x256xf32>
    %6 = arith.mulf %4, %5 : vector<64x256xf32>
    %7 = vector.extract_strided_slice %1 {offsets = [0, 1], sizes = [64, 1], strides = [1, 1]} : vector<64x2xf32> to vector<64x1xf32>
    %8 = vector.extract_strided_slice %0 {offsets = [1, 0], sizes = [1, 256], strides = [1, 1]} : vector<2x256xf32> to vector<1x256xf32>
    %9 = vector.broadcast %7 : vector<64x1xf32> to vector<64x256xf32>
    %10 = vector.broadcast %8 : vector<1x256xf32> to vector<64x256xf32>
    %11 = arith.mulf %9, %10 : vector<64x256xf32>
    %12 = arith.addf %6, %11 : vector<64x256xf32>
    %c0_3 = arith.constant 0 : index
    %c0_4 = arith.constant 0 : index
    %13 = vector.load %arg3[%c0_3, %c0_4] : memref<64x1xf32, #tpu.memory_space<vmem>>, vector<64x1xf32>
    %14 = vector.broadcast %13 : vector<64x1xf32> to vector<64x256xf32>
    %15 = arith.addf %12, %14 : vector<64x256xf32>
    %16 = math.tanh %15 : vector<64x256xf32>
    %c0_5 = arith.constant 0 : index
    %c0_6 = arith.constant 0 : index
    %17 = vector.load %arg4[%c0_5, %c0_6] : memref<32x64xf32, #tpu.memory_space<vmem>>, vector<32x64xf32>
    %cst = arith.constant dense<0.000000e+00> : vector<32x256xf32>
    %18 = tpu.matmul %17, %16, %cst {dimension_numbers = #tpu.dot_dimension_numbers<[1], [0], [0], [1], [0, 0, 1, 1], [], []>} : vector<32x64xf32>, vector<64x256xf32>, vector<32x256xf32> -> vector<32x256xf32>
    %c0_7 = arith.constant 0 : index
    %c0_8 = arith.constant 0 : index
    %19 = vector.load %arg5[%c0_7, %c0_8] : memref<32x1xf32, #tpu.memory_space<vmem>>, vector<32x1xf32>
    %20 = vector.broadcast %19 : vector<32x1xf32> to vector<32x256xf32>
    %21 = arith.addf %18, %20 : vector<32x256xf32>
    %22 = math.tanh %21 : vector<32x256xf32>
    %c0_9 = arith.constant 0 : index
    %c0_10 = arith.constant 0 : index
    %23 = vector.load %arg6[%c0_9, %c0_10] : memref<16x32xf32, #tpu.memory_space<vmem>>, vector<16x32xf32>
    %cst_11 = arith.constant dense<0.000000e+00> : vector<16x256xf32>
    %24 = tpu.matmul %23, %22, %cst_11 {dimension_numbers = #tpu.dot_dimension_numbers<[1], [0], [0], [1], [0, 0, 1, 1], [], []>} : vector<16x32xf32>, vector<32x256xf32>, vector<16x256xf32> -> vector<16x256xf32>
    %c0_12 = arith.constant 0 : index
    %c0_13 = arith.constant 0 : index
    %25 = vector.load %arg7[%c0_12, %c0_13] : memref<16x1xf32, #tpu.memory_space<vmem>>, vector<16x1xf32>
    %26 = vector.broadcast %25 : vector<16x1xf32> to vector<16x256xf32>
    %27 = arith.addf %24, %26 : vector<16x256xf32>
    %28 = math.tanh %27 : vector<16x256xf32>
    %c0_14 = arith.constant 0 : index
    %c0_15 = arith.constant 0 : index
    %29 = vector.load %arg8[%c0_14, %c0_15] : memref<8x16xf32, #tpu.memory_space<vmem>>, vector<8x16xf32>
    %cst_16 = arith.constant dense<0.000000e+00> : vector<8x256xf32>
    %30 = tpu.matmul %29, %28, %cst_16 {dimension_numbers = #tpu.dot_dimension_numbers<[1], [0], [0], [1], [0, 0, 1, 1], [], []>} : vector<8x16xf32>, vector<16x256xf32>, vector<8x256xf32> -> vector<8x256xf32>
    %c0_17 = arith.constant 0 : index
    %c0_18 = arith.constant 0 : index
    %31 = vector.load %arg9[%c0_17, %c0_18] : memref<8x1xf32, #tpu.memory_space<vmem>>, vector<8x1xf32>
    %32 = vector.broadcast %31 : vector<8x1xf32> to vector<8x256xf32>
    %33 = arith.addf %30, %32 : vector<8x256xf32>
    %34 = math.tanh %33 : vector<8x256xf32>
    %c0_19 = arith.constant 0 : index
    %c0_20 = arith.constant 0 : index
    %35 = vector.load %arg10[%c0_19, %c0_20] : memref<8x1xf32, #tpu.memory_space<vmem>>, vector<8x1xf32>
    %36 = vector.broadcast %35 : vector<8x1xf32> to vector<8x256xf32>
    %37 = arith.mulf %36, %34 : vector<8x256xf32>
    %cst_21 = arith.constant dense<0.000000e+00> : vector<256xf32>
    %38 = vector.multi_reduction <add>, %37, %cst_21 [0] : vector<8x256xf32> to vector<256xf32>
    %39 = vector.shape_cast %38 : vector<256xf32> to vector<1x256xf32>
    %c0_22 = arith.constant 0 : index
    %c0_23 = arith.constant 0 : index
    %40 = vector.load %arg11[%c0_22, %c0_23] : memref<1x1xf32, #tpu.memory_space<vmem>>, vector<1x1xf32>
    %41 = vector.broadcast %40 : vector<1x1xf32> to vector<1x256xf32>
    %42 = arith.addf %39, %41 : vector<1x256xf32>
    %c0_24 = arith.constant 0 : index
    %c0_25 = arith.constant 0 : index
    %43 = vector.load %arg12[%c0_24, %c0_25] : memref<1x256xf32, #tpu.memory_space<vmem>>, vector<1x256xf32>
    tpu.vector_store %arg12[%c0_24, %c0_25], %42 {strides = array<i32>} : memref<1x256xf32, #tpu.memory_space<vmem>>, vector<1x256xf32>,
    return
  }
  func.func @transform_0(%arg0: i32) -> (i32, i32) {
    %c0_i32 = arith.constant 0 : i32
    %c0_i32_0 = arith.constant 0 : i32
    return %c0_i32, %arg0 : i32, i32
  }
  func.func @transform_1(%arg0: i32) -> (i32, i32) {
    %c0_i32 = arith.constant 0 : i32
    %c0_i32_0 = arith.constant 0 : i32
    %c0_i32_1 = arith.constant 0 : i32
    return %c0_i32, %c0_i32_0 : i32, i32
  }
  func.func @transform_2(%arg0: i32) -> (i32, i32) {
    %c0_i32 = arith.constant 0 : i32
    %c0_i32_0 = arith.constant 0 : i32
    %c0_i32_1 = arith.constant 0 : i32
    return %c0_i32, %c0_i32_0 : i32, i32
  }
  func.func @transform_3(%arg0: i32) -> (i32, i32) {
    %c0_i32 = arith.constant 0 : i32
    %c0_i32_0 = arith.constant 0 : i32
    %c0_i32_1 = arith.constant 0 : i32
    return %c0_i32, %c0_i32_0 : i32, i32
  }
  func.func @transform_4(%arg0: i32) -> (i32, i32) {
    %c0_i32 = arith.constant 0 : i32
    %c0_i32_0 = arith.constant 0 : i32
    %c0_i32_1 = arith.constant 0 : i32
    return %c0_i32, %c0_i32_0 : i32, i32
  }
  func.func @transform_5(%arg0: i32) -> (i32, i32) {
    %c0_i32 = arith.constant 0 : i32
    %c0_i32_0 = arith.constant 0 : i32
    %c0_i32_1 = arith.constant 0 : i32
    return %c0_i32, %c0_i32_0 : i32, i32
  }
  func.func @transform_6(%arg0: i32) -> (i32, i32) {
    %c0_i32 = arith.constant 0 : i32
    %c0_i32_0 = arith.constant 0 : i32
    %c0_i32_1 = arith.constant 0 : i32
    return %c0_i32, %c0_i32_0 : i32, i32
  }
  func.func @transform_7(%arg0: i32) -> (i32, i32) {
    %c0_i32 = arith.constant 0 : i32
    %c0_i32_0 = arith.constant 0 : i32
    %c0_i32_1 = arith.constant 0 : i32
    return %c0_i32, %c0_i32_0 : i32, i32
  }
  func.func @transform_8(%arg0: i32) -> (i32, i32) {
    %c0_i32 = arith.constant 0 : i32
    %c0_i32_0 = arith.constant 0 : i32
    %c0_i32_1 = arith.constant 0 : i32
    return %c0_i32, %c0_i32_0 : i32, i32
  }
  func.func @transform_9(%arg0: i32) -> (i32, i32) {
    %c0_i32 = arith.constant 0 : i32
    %c0_i32_0 = arith.constant 0 : i32
    %c0_i32_1 = arith.constant 0 : i32
    return %c0_i32, %c0_i32_0 : i32, i32
  }
  func.func @transform_10(%arg0: i32) -> (i32, i32) {
    %c0_i32 = arith.constant 0 : i32
    %c0_i32_0 = arith.constant 0 : i32
    %c0_i32_1 = arith.constant 0 : i32
    return %c0_i32, %c0_i32_0 : i32, i32
  }
  func.func @transform_11(%arg0: i32) -> (i32, i32) {
    %c0_i32 = arith.constant 0 : i32
    %c0_i32_0 = arith.constant 0 : i32
    return %c0_i32, %arg0 : i32, i32
  }
}

</mosaic_0001>

<bundles_post_ra>
// kernel: tpu_custom_call.1
= control target key start
LH: loop header
LB: loop body
LE: loop exit
PB: predicated region body
PF: predicated region fallthrough
CT: control target
= control target key end

     0   :  { %s1644_s0 = inlined_call_operand.vmem [shape: f32[2,512], index: 0, kind: input, shape index: {}]   ;;  %s1645_s1 = inlined_call_operand.vmem [shape: f32[64,2], index: 1, kind: input, shape index: {}]   ;;  %s1646_s2 = inlined_call_operand.vmem [shape: f32[64,1], index: 2, kind: input, shape index: {}]   ;;  %s1647_s3 = inlined_call_operand.vmem [shape: f32[32,64], index: 3, kind: input, shape index: {}]   ;;  %s1648_s4 = inlined_call_operand.vmem [shape: f32[32,1], index: 4, kind: input, shape index: {}]   ;;  %s1649_s5 = inlined_call_operand.vmem [shape: f32[16,32], index: 5, kind: input, shape index: {}]   ;;  %s1650_s6 = inlined_call_operand.vmem [shape: f32[16,1], index: 6, kind: input, shape index: {}]   ;;  %s1651_s7 = inlined_call_operand.vmem [shape: f32[8,16], index: 7, kind: input, shape index: {}]   ;;  %s1652_s8 = inlined_call_operand.vmem [shape: f32[8,1], index: 8, kind: input, shape index: {}]   ;;  %s1653_s9 = inlined_call_operand.vmem [shape: f32[8,1], index: 9, kind: input, shape index: {}]   ;;  %s1654_s10 = inlined_call_operand.<no memory space> [shape: f32[1,1], index: 10, kind: input, shape index: {}]   ;;  %s1655_s11 = inlined_call_operand.hbm [shape: f32[1,512], index: 11, kind: output, shape index: {}]  }
   0x1   :  { %v16_v0 = vstv %s1654_s10 }
   0x2   :  { %17 = vst [vmem:[#allocation2] sm:$0x1] %v16_v0 }
   0x3   :  { %18 = vsyncpa [#allocation4], 0 }
   0x4   :  { %20 = vsyncpa [#allocation4 + $0x1], 0  ;;  %s1382_s19 = smov 0   ;;  %s1384_s20 = smov 0  }
   0x5   :  { %s1386_s21 = smov 0   ;;  %s1388_s22 = smov 0  }
   0x6 LB: > { %s1403_s10 = sadd.s32 4294967295, %s1312_s22   ;;  %s1089_s23 = sadd.s32 4294967294, %s1312_s22   ;;  %s1312_s22 = sphi %s1388_s22, %s1661_s22   ;;  %s1308_s21 = sphi %s1386_s21, %s1660_s21   ;;  %s1304_s20 = sphi %s1384_s20, %s1659_s20   ;;  %s1300_s19 = sphi %s1382_s19, %s1658_s19  }
   0x7   : > { %s1407_s24 = sadd.s32 1, %s1312_s22   ;;  %s269_s25 = sadd.s32 1, %s1308_s21 }
   0x8   : > { %s266_s26 = ssub.s32 %s1312_s22, %s1407_s24  ;;  %p279_p0 = scmp.ne.s32.totalorder %s1308_s21, %s1304_s20 }
   0x9   : > { %p267_p1 = scmp.eq.s32.totalorder %s266_s26, 0  ;;  %p280_p2 = scmp.eq.s32.totalorder %s1403_s10, 1 }
   0xa   : > { %p285_p3 = scmp.ne.s32.totalorder %s1304_s20, %s1300_s19  ;;  %p286_p4 = scmp.eq.s32.totalorder %s1089_s23, 1 }
   0xb   : > { %s1418_s27 = scalar_select %p267_p1, %s1308_s21, %s269_s25  }
   0xc   : > { %p1420_p5 = por %p280_p2, %p279_p0  ;;  %p1424_p6 = por %p286_p4, %p285_p3 }
   0xd   : > { %p1092_p7 = scmp.ge.s32.totalorder %s1312_s22, 1  ;;  %p343_p8 = scmp.lt.s32.totalorder %s1312_s22, 3 }
   0xf   : > { %p344_p9 = pnand %p1092_p7, %p343_p8 }
  0x10   : > { %v393_v1 = vld [vmem:[%s1645_s1 + $0x10] sm:$0xff] (!%p344_p9)  ;;  %v391_v2 = vld [vmem:[%s1645_s1] sm:$0xff] (!%p344_p9)  ;;  %v1314_v3 = vmov (!%p344_p9), 1   ;;  %v392_v5 = vld [vmem:[%s1645_s1 + $0x8] sm:$0xff] (!%p344_p9)  ;;  %v1315_v8 = vmov (!%p344_p9), 0   ;;  %v1316_v28 = vmov (!%p344_p9), 0.0   ;;  %v440_v29 = vlaneseq (!%p344_p9) }
  0x11   : > { %347 = sbr.rel (%p344_p9) target bundleno = 971 (0x3cb), region = 64  ;;  %1182 = vset.pattern.permute.xlu0 (!%p344_p9), %v1314_v3  ;;  %1180 = vset.pattern.permute.xlu1 (!%p344_p9), %v1314_v3  ;;  %v395_v4 = vld [vmem:[%s1645_s1 + $0x20] sm:$0xff] (!%p344_p9)  ;;  %v397_v6 = vld [vmem:[%s1645_s1 + $0x30] sm:$0xff] (!%p344_p9)  ;;  %v394_v7 = vld [vmem:[%s1645_s1 + $0x18] sm:$0xff] (!%p344_p9)  ;;  %s1094_s15 = sshll.u32 (!%p344_p9), %s1403_s10, 1  ;;  %vm664_vm0 = vcmask (!%p344_p9), 523264  }
  0x12   : > { %483 = vperm.xlu0 (!%p344_p9), %1182, %v393_v1   ;;  %475 = vperm.xlu1 (!%p344_p9), %1180, %v391_v2   ;;  %v556_v9 = vld [vmem:[%s1646_s2] sm:$0xff] (!%p344_p9)  ;;  %v557_v10 = vld [vmem:[%s1646_s2 + $0x8] sm:$0xff] (!%p344_p9)  ;;  %v559_v12 = vld [vmem:[%s1646_s2 + $0x18] sm:$0xff] (!%p344_p9)  ;;  %p384_p10 = scmp.lt.s32.totalorder (!%p344_p9), %s1094_s15, 3  ;;  %v1506_v32 = vshrl.u32 (!%p344_p9), %v440_v29, 7  ;;  %vm788_vm1 = vcmask (!%p344_p9), 261120  }
  0x13   : > { %v396_v11 = vld [vmem:[%s1645_s1 + $0x28] sm:$0xff] (!%p344_p9)  ;;  %v640_v14 = vld [vmem:[%s1648_s4] sm:$0xff] (!%p344_p9)  ;;  %v558_v15 = vld [vmem:[%s1646_s2 + $0x10] sm:$0xff] (!%p344_p9)  ;;  %741 = vmatprep.mubr.f32.mxu0 (!%p344_p9), %v1316_v28  ;;  %859 = vmatprep.mubr.f32.mxu1 (!%p344_p9), %v1316_v28  ;;  %vm883_vm2 = vcmask (!%p344_p9), 130048   ;;  %s380_s12 = sand.u32 (!%p344_p9), 1, %s1304_s20   ;;  %s1108_s14 = sshll.u32 (!%p344_p9), %s1403_s10, 5 }
  0x14   : > { %v561_v13 = vld [vmem:[%s1646_s2 + $0x28] sm:$0xff] (!%p344_p9)  ;;  %v642_v16 = vld [vmem:[%s1648_s4 + $0x10] sm:$0xff] (!%p344_p9)  ;;  %v776_v17 = vld [vmem:[%s1650_s6] sm:$0xff] (!%p344_p9)  ;;  %v508_v35 = vsub.s32 (!%p344_p9), 1, %v1506_v32  ;;  %v1515_v36 = vsub.s32 (!%p344_p9), 0, %v1506_v32  ;;  %v512_v37 = vsub.s32 (!%p344_p9), 3, %v1506_v32 }
  0x15   : > { %v398_v18 = vld [vmem:[%s1645_s1 + $0x38] sm:$0xff] (!%p344_p9)  ;;  %v877_v19 = vld [vmem:[%s1652_s8] sm:$0xff] (!%p344_p9)  ;;  %v562_v22 = vld [vmem:[%s1646_s2 + $0x30] sm:$0xff] (!%p344_p9)  ;;  %v446_v39 = vsub.s32 (!%p344_p9), 2, %v1506_v32  ;;  %s1093_s13 = sshll.u32 (!%p344_p9), %s380_s12, 1  ;;  %vm1012_vm3 = vcmp.lt.s32.totalorder (!%p344_p9), %v440_v29, 256 }
  0x16   : > { %491 = vperm.xlu0 (!%p344_p9), %1182, %v395_v4   ;;  %479 = vperm.xlu1 (!%p344_p9), %1180, %v392_v5   ;;  %v980_v20 = vld [vmem:[#allocation2] sm:$0x1] (!%p344_p9)  ;;  %v563_v23 = vld [vmem:[%s1646_s2 + $0x38] sm:$0xff] (!%p344_p9)  ;;  %v641_v24 = vld [vmem:[%s1648_s4 + $0x8] sm:$0xff] (!%p344_p9)  ;;  %s1016_s25 = scalar_lea.sflag (!%p344_p9), [#allocation4], %s380_s12  ;;  %s1318_s10 = smov (!%p344_p9), [#allocation3]  }
  0x17   : > { %v560_v21 = vld [vmem:[%s1646_s2 + $0x20] sm:$0xff] (!%p344_p9)  ;;  %v643_v25 = vld [vmem:[%s1648_s4 + $0x18] sm:$0xff] (!%p344_p9)  ;;  %v777_v26 = vld [vmem:[%s1650_s6 + $0x8] sm:$0xff] (!%p344_p9)  ;;  %s1254_s30 = sshll.u32 (!%p344_p9), %s1318_s10, 4  ;;  %s1255_s30 = int_to_ptr.vmem [resolvable:$false] %s1254_s30 }
  0x18   : > { %v960_v27 = vld [vmem:[%s1653_s9] sm:$0xff]  ;;  %s1663_s15 = smov (!%p384_p10, %s1094_s15), 3 }
  0x19   : > { %s1095_s16 = sshll.u32 %s1663_s15, 1  ;;  %s382_s15 = scalar_lea.vmem [#allocation3], %s1093_s13 }
  0x1a   : > { %499 = vperm.xlu0 %1182, %v397_v6   ;;  %1181 = vset.pattern.permute.xlu1 %v1315_v8  ;;  %s387_s23 = scalar_lea.vmem %s1644_s0, %s1095_s16  ;;  %s1030_s16 = sshll.u32 %s382_s15, 4  ;;  %s1604_s16 = int_to_ptr.vmem [resolvable:$true] %s1030_s16 }
  0x1b   : > { %416 = vperm.xlu1 %1181, %v394_v7   ;;  %v390_v38 = vld [vmem:[%s387_s23] sm:$0xf]  ;;  %s1602_s23 = scalar_lea.hbm %s1655_s11, %s1108_s14  ;;  %s1250_s26 = scalar_lea.vmem %s1604_s16, 32 }
  0x1c   : > { %v509_v42 = vrot.slane %v390_v38, %v508_v35  ;;  %v443_v43 = vrot.slane %v390_v38, %v1515_v36  ;;  %v513_v44 = vrot.slane %v390_v38, %v512_v37  ;;  %v447_v45 = vrot.slane %v390_v38, %v446_v39  ;;  %p1251_p11 = scmp.ne.s32.totalorder %s1604_s16, %s1250_s26  ;;  %s1256_s13 = scalar_lea.vmem %s1255_s30, 64 }
  0x1d   : > { %p1257_p0 = scmp.lt.s32.totalorder %s1604_s16, %s1255_s30  ;;  %p1258_p1 = scmp.lt.s32.totalorder %s1256_s13, %s1250_s26 }
  0x1e   : > { %1187 = vset.pattern.permute.xlu0 %v1315_v8  ;;  %v1522_v47 = vrot.slane %v509_v42, %v508_v35  ;;  %v1525_v48 = vrot.slane %v443_v43, %v1515_v36  ;;  %v1527_v50 = vrot.slane %v513_v44, %v508_v35  ;;  %v1530_v51 = vrot.slane %v447_v45, %v1515_v36  ;;  %p1252_p12 = pnand %p1251_p11, %p1420_p5 }
  0x1f   : > { %401 = vperm.xlu0 %1187, %v391_v2   ;;  %1183 = vset.pattern.permute.xlu1 %v1314_v3  ;;  %p1259_p2 = por %p1258_p1, %p1257_p0 }
  0x20   : > { %487 = vperm.xlu1 %1183, %v394_v7   ;;  %p1253_p13 = pneg %p1252_p12 }
  0x22   : > { %p1260_p3 = pnand %p1259_p2, %p1253_p13 }
  0x23   : > { %406 = vperm.xlu0 %1187, %v392_v5  }
  0x24   : > { %1184 = vset.pattern.permute.xlu1 %v1315_v8 }
  0x25   : > { %566 = vperm.xlu1 %1184, %v556_v9  }
  0x27   : > { %411 = vperm.xlu0 %1187, %v393_v1  }
  0x29   : > { %421 = vperm.xlu1 %1184, %v395_v4  }
  0x2b   : > { %571 = vperm.xlu0 %1187, %v557_v10  }
  0x2d   : > { %426 = vperm.xlu1 %1184, %v396_v11  }
  0x2f   : > { %581 = vperm.xlu0 %1187, %v559_v12  }
  0x31   : > { %1185 = vset.pattern.permute.xlu1 %v1314_v3 }
  0x32   : > { %495 = vperm.xlu1 %1185, %v396_v11  }
  0x33   : > { %591 = vperm.xlu0 %1187, %v561_v13  }
  0x36   : > { %1186 = vset.pattern.permute.xlu1 %v1315_v8 }
  0x37   : > { %646 = vperm.xlu0 %1187, %v640_v14   ;;  %576 = vperm.xlu1 %1186, %v558_v15  }
  0x3b   : > { %656 = vperm.xlu0 %1187, %v642_v16   ;;  %431 = vperm.xlu1 %1186, %v397_v6  }
  0x3f   : > { %780 = vperm.xlu0 %1187, %v776_v17   ;;  %436 = vperm.xlu1 %1186, %v398_v18  }
  0x43   : > { %880 = vperm.xlu0 %1187, %v877_v19   ;;  %1188 = vset.pattern.permute.xlu1 %v1314_v3 }
  0x44   : > { %503 = vperm.xlu1 %1188, %v398_v18  }
  0x47   : > { %983 = vperm.xlu0 %1187, %v980_v20  }
  0x48   : > { %1189 = vset.pattern.permute.xlu1 %v1315_v8 }
  0x49   : > { %586 = vperm.xlu1 %1189, %v560_v21  }
  0x4d   : > { %596 = vperm.xlu1 %1189, %v562_v22  }
  0x51   : > { %601 = vperm.xlu1 %1189, %v563_v23  }
  0x55   : > { %651 = vperm.xlu1 %1189, %v641_v24  }
  0x59   : > { %661 = vperm.xlu1 %1189, %v643_v25  }
  0x5d   : > { %785 = vperm.xlu1 %1189, %v777_v26  }
  0x61   : > { %963 = vperm.xlu1 %1189, %v960_v27  }
  0x91   : > { %v476_v30 = vpop.permute.xlu1 %475  ;;  %v484_v31 = vpop.permute.xlu0 %483 }
  0x92   : > { %v524_v55 = vmul.f32 %v1522_v47, %v476_v30  ;;  %v525_v56 = vmul.f32 %v1527_v50, %v476_v30  ;;  %v528_v12 = vmul.f32 %v1522_v47, %v484_v31  ;;  %v529_v14 = vmul.f32 %v1527_v50, %v484_v31 }
  0x95   : > { %v480_v33 = vpop.permute.xlu1 %479  ;;  %v1511_v34 = vpop.permute.xlu0 %491 }
  0x96   : > { %v526_v63 = vmul.f32 %v1522_v47, %v480_v33  ;;  %v527_v0 = vmul.f32 %v1527_v50, %v480_v33 }
  0x99   : > { %v1519_v40 = vpop.permute.xlu0 %499 }
  0x9a   : > { %v417_v41 = vpop.permute.xlu1 %416 }
  0x9b   : > { %v464_v13 = vmul.f32 %v1525_v48, %v417_v41  ;;  %v465_v15 = vmul.f32 %v1530_v51, %v417_v41 }
  0x9e   : > { %v402_v46 = vpop.permute.xlu0 %401 }
  0x9f   : > { %v488_v49 = vpop.permute.xlu1 %487  ;;  %v458_v52 = vmul.f32 %v1525_v48, %v402_v46  ;;  %v459_v53 = vmul.f32 %v1530_v51, %v402_v46 }
  0xa0   : > { %v530_v10 = vmul.f32 %v1522_v47, %v488_v49  ;;  %v531_v11 = vmul.f32 %v1527_v50, %v488_v49 }
  0xa1   : > { %v540_v60 = vadd.f32 %v524_v55, %v458_v52  ;;  %v541_v61 = vadd.f32 %v525_v56, %v459_v53  ;;  %v532_v55 = vmul.f32 %v1522_v47, %v1511_v34  ;;  %v533_v56 = vmul.f32 %v1527_v50, %v1511_v34 }
  0xa2   : > { %v407_v54 = vpop.permute.xlu0 %406  ;;  %v546_v20 = vadd.f32 %v530_v10, %v464_v13  ;;  %v547_v21 = vadd.f32 %v531_v11, %v465_v15  ;;  %v537_v10 = vmul.f32 %v1527_v50, %v1519_v40 }
  0xa3   : > { %v460_v58 = vmul.f32 %v1525_v48, %v407_v54  ;;  %v461_v59 = vmul.f32 %v1530_v51, %v407_v54 }
  0xa4   : > { %v567_v57 = vpop.permute.xlu1 %566 }
  0xa5   : > { %v604_v1 = vadd.f32 %v567_v57, %v540_v60  ;;  %v605_v2 = vadd.f32 %v567_v57, %v541_v61  ;;  %v542_v4 = vadd.f32 %v526_v63, %v460_v58  ;;  %v543_v5 = vadd.f32 %v527_v0, %v461_v59 }
  0xa6   : > { %v412_v62 = vpop.permute.xlu0 %411 }
  0xa7   : > { %1190 = vtanh.f32 %v604_v1  ;;  %v462_v16 = vmul.f32 %v1525_v48, %v412_v62  ;;  %v463_v17 = vmul.f32 %v1530_v51, %v412_v62 }
  0xa8   : > { %v422_v3 = vpop.permute.xlu1 %421  ;;  %1192 = vtanh.f32 %v605_v2 }
  0xa9   : > { %v544_v25 = vadd.f32 %v528_v12, %v462_v16  ;;  %v545_v26 = vadd.f32 %v529_v14, %v463_v17  ;;  %v466_v57 = vmul.f32 %v1525_v48, %v422_v3  ;;  %v467_v58 = vmul.f32 %v1530_v51, %v422_v3 }
  0xaa   : > { %v572_v6 = vpop.permute.xlu0 %571 }
  0xab   : > { %v606_v7 = vadd.f32 %v572_v6, %v542_v4  ;;  %v607_v8 = vadd.f32 %v572_v6, %v543_v5  ;;  %v548_v5 = vadd.f32 %v532_v55, %v466_v57  ;;  %v549_v6 = vadd.f32 %v533_v56, %v467_v58 }
  0xac   : > { %v427_v9 = vpop.permute.xlu1 %426 }
  0xad   : > { %1194 = vtanh.f32 %v606_v7  ;;  %v468_v45 = vmul.f32 %v1525_v48, %v427_v9  ;;  %v469_v46 = vmul.f32 %v1530_v51, %v427_v9 }
  0xae   : > { %1196 = vtanh.f32 %v607_v8  ;;  %v582_v18 = vpop.permute.xlu0 %581  ;;  %v536_v8 = vmul.f32 %v1522_v47, %v1519_v40 }
  0xaf   : > { %v610_v22 = vadd.f32 %v582_v18, %v546_v20  ;;  %v611_v24 = vadd.f32 %v582_v18, %v547_v21 }
  0xb1   : > { %v496_v19 = vpop.permute.xlu1 %495  ;;  %v1191_v23 = vpop.eup %1190  ;;  %1198 = vtanh.f32 %v610_v22 }
  0xb2   : > { %v1193_v27 = vpop.eup %1192  ;;  %1200 = vtanh.f32 %v611_v24  ;;  %v534_v42 = vmul.f32 %v1522_v47, %v496_v19  ;;  %v535_v43 = vmul.f32 %v1527_v50, %v496_v19  ;;  %v592_v61 = vpop.permute.xlu0 %591 }
  0xb4   : > { %v550_v49 = vadd.f32 %v534_v42, %v468_v45  ;;  %v551_v53 = vadd.f32 %v535_v43, %v469_v46 }
  0xb6   : > { %v577_v30 = vpop.permute.xlu1 %576  ;;  %v614_v63 = vadd.f32 %v592_v61, %v550_v49  ;;  %v615_v1 = vadd.f32 %v592_v61, %v551_v53  ;;  %v647_v42 = vpop.permute.xlu0 %646 }
  0xb7   : > { %v1195_v33 = vpop.eup %1194  ;;  %v608_v35 = vadd.f32 %v577_v30, %v544_v25  ;;  %v609_v31 = vadd.f32 %v577_v30, %v545_v26 }
  0xb8   : > { %v1197_v37 = vpop.eup %1196  ;;  %v1111_v38 = vpack.c.bf16 %v1195_v33, %v1191_v23 }
  0xb9   : > { %v1109_v39 = vpack.c.bf16 %v1197_v37, %v1193_v27  ;;  %1202 = vtanh.f32 %v608_v35  ;;  %v636_v37 = vld [vmem:[%s1647_s3] sm:$0xff] }
  0xba   : > { %v432_v41 = vpop.permute.xlu1 %431  ;;  %1204 = vtanh.f32 %v609_v31  ;;  %v657_v56 = vpop.permute.xlu0 %656 }
  0xbb   : > { %1110 = vmatprep.subr.bf16.mxu0 %v1109_v39  ;;  %v1199_v52 = vpop.eup %1198  ;;  %v470_v4 = vmul.f32 %v1525_v48, %v432_v41  ;;  %v471_v7 = vmul.f32 %v1530_v51, %v432_v41  ;;  %1206 = vtanh.f32 %v614_v63  ;;  %v638_v39 = vld [vmem:[%s1647_s3 + $0x10] sm:$0xff]  ;;  %v639_v41 = vld [vmem:[%s1647_s3 + $0x18] sm:$0xff] }
  0xbc   : > { %1112 = vmatpush1.bf16.msra.mxu0 %v1111_v38  ;;  %v1201_v54 = vpop.eup %1200  ;;  %1208 = vtanh.f32 %v615_v1  ;;  %v637_v38 = vld [vmem:[%s1647_s3 + $0x8] sm:$0xff] }
  0xbd   : > { %v552_v13 = vadd.f32 %v536_v8, %v470_v4  ;;  %v553_v15 = vadd.f32 %v537_v10, %v471_v7 }
  0xbe   : > { %v437_v44 = vpop.permute.xlu1 %436 }
  0xbf   : > { %v472_v16 = vmul.f32 %v1525_v48, %v437_v44  ;;  %v473_v17 = vmul.f32 %v1530_v51, %v437_v44 }
  0xc3   : > { %v504_v59 = vpop.permute.xlu1 %503  ;;  %v1203_v60 = vpop.eup %1202 }
  0xc4   : > { %v1205_v62 = vpop.eup %1204  ;;  %v1115_v0 = vpack.c.bf16 %v1199_v52, %v1203_v60  ;;  %v538_v11 = vmul.f32 %v1522_v47, %v504_v59  ;;  %v539_v12 = vmul.f32 %v1527_v50, %v504_v59 }
  0xc5   : > { %v1113_v2 = vpack.c.bf16 %v1201_v54, %v1205_v62  ;;  %v1207_v47 = vpop.eup %1206 }
  0xc6   : > { %v554_v20 = vadd.f32 %v538_v11, %v472_v16  ;;  %v555_v21 = vadd.f32 %v539_v12, %v473_v17  ;;  %v1209_v50 = vpop.eup %1208 }
  0xc7   : > { %1114 = vmatprep.subr.bf16.mxu0 %v1113_v2 }
  0xc8   : > { %v587_v34 = vpop.permute.xlu1 %586  ;;  %1116 = vmatpush1.bf16.msra.mxu0 %v1115_v0 }
  0xc9   : > { %v612_v3 = vadd.f32 %v587_v34, %v548_v5  ;;  %v613_v9 = vadd.f32 %v587_v34, %v549_v6 }
  0xcb   : > { %1210 = vtanh.f32 %v612_v3 }
  0xcc   : > { %1212 = vtanh.f32 %v613_v9  ;;  %v597_v14 = vpop.permute.xlu1 %596 }
  0xcd   : > { %v616_v18 = vadd.f32 %v597_v14, %v552_v13  ;;  %v617_v19 = vadd.f32 %v597_v14, %v553_v15  ;;  %v774_v13 = vld [vmem:[%s1649_s5] sm:$0xff]  ;;  %v775_v14 = vld [vmem:[%s1649_s5 + $0x8] sm:$0xff]  ;;  %v781_v15 = vpop.permute.xlu0 %780 }
  0xcf   : > { %1214 = vtanh.f32 %v616_v18 }
  0xd0   : > { %v602_v22 = vpop.permute.xlu1 %601  ;;  %1216 = vtanh.f32 %v617_v19 }
  0xd1   : > { %v618_v40 = vadd.f32 %v602_v22, %v554_v20  ;;  %v619_v23 = vadd.f32 %v602_v22, %v555_v21 }
  0xd3   : > { %1218 = vtanh.f32 %v618_v40 }
  0xd4   : > { %1220 = vtanh.f32 %v619_v23  ;;  %v652_v49 = vpop.permute.xlu1 %651 }
  0xd5   : > { %v1211_v24 = vpop.eup %1210 }
  0xd6   : > { %v1213_v25 = vpop.eup %1212  ;;  %v1119_v26 = vpack.c.bf16 %v1207_v47, %v1211_v24 }
  0xd7   : > { %v1117_v27 = vpack.c.bf16 %v1209_v50, %v1213_v25 }
  0xd8   : > { %v662_v61 = vpop.permute.xlu1 %661 }
  0xd9   : > { %1118 = vmatprep.subr.bf16.mxu0 %v1117_v27  ;;  %v1215_v48 = vpop.eup %1214  ;;  %v876_v27 = vld [vmem:[%s1651_s7] sm:$0xff] }
  0xda   : > { %1120 = vmatpush1.bf16.msra.mxu0 %v1119_v26  ;;  %v1217_v51 = vpop.eup %1216 }
  0xdc   : > { %v786_v20 = vpop.permute.xlu1 %785 }
  0xdd   : > { %v1219_v30 = vpop.eup %1218 }
  0xde   : > { %v1221_v33 = vpop.eup %1220  ;;  %v1123_v35 = vpack.c.bf16 %v1219_v30, %v1215_v48  ;;  %v881_v48 = vpop.permute.xlu0 %880 }
  0xdf   : > { %v1121_v31 = vpack.c.bf16 %v1221_v33, %v1217_v51 }
  0xe1   : > { %1122 = vmatprep.subr.bf16.mxu0 %v1121_v31 }
  0xe2   : > { %1124 = vmatpush1.bf16.msra.mxu0 %v1123_v35 }
  0xe5   : > { %1096 = vmatmul.mubr.msk.f32.vlgmr.msra.gmra.mrb[0].mxu0 %vm664_vm0, %v636_v37  ;;  %v964_v37 = vpop.permute.xlu1 %963 }
  0xe6   : > { %747 = vmatprep.mubr.f32.mxu0 %v1316_v28 }
  0xe9   : > { %1097 = vmatmul.mubr.msk.f32.gmra.mrb[2].mxu0 %vm664_vm0, %v637_v38 }
  0xea   : > { %753 = vmatprep.mubr.f32.mxu0 %v1316_v28 }
  0xed   : > { %1098 = vmatmul.mubr.msk.f32.gmra.mrb[4].mxu0 %vm664_vm0, %v638_v39 }
  0xee   : > { %759 = vmatprep.mubr.f32.mxu0 %v1316_v28 }
  0xf1   : > { %1099 = vmatmul.mubr.msk.f32.gmra.mrb[6].mxu0 %vm664_vm0, %v639_v41 }
 0x1b8   : > { %v743_v43 = vpop.f32.mrb[0].mxu0 }
 0x1b9   : > { %v744_v44 = vadd.f32 %v743_v43, %v647_v42  ;;  %v745_v45 = vpop.f32.mrb[1].mxu0 }
 0x1ba   : > { %v746_v46 = vadd.f32 %v745_v45, %v647_v42 }
 0x1bb   : > { %1222 = vtanh.f32 %v744_v44 }
 0x1bc   : > { %v749_v52 = vpop.f32.mrb[2].mxu0  ;;  %1224 = vtanh.f32 %v746_v46 }
 0x1bd   : > { %v750_v53 = vadd.f32 %v749_v52, %v652_v49  ;;  %v751_v54 = vpop.f32.mrb[3].mxu0  ;;  %v1317_v52 = vmov 1966171168  }
 0x1be   : > { %v752_v55 = vadd.f32 %v751_v54, %v652_v49 }
 0x1bf   : > { %1226 = vtanh.f32 %v750_v53  ;;  %v996_v53 = vunpack.c.l.s4 %v1317_v52 }
 0x1c0   : > { %1228 = vtanh.f32 %v752_v55  ;;  %v755_v57 = vpop.f32.mrb[4].mxu0  ;;  %v984_v55 = vpop.permute.xlu0 %983 }
 0x1c1   : > { %v756_v58 = vadd.f32 %v755_v57, %v657_v56  ;;  %v757_v59 = vpop.f32.mrb[5].mxu0 }
 0x1c2   : > { %v758_v60 = vadd.f32 %v757_v59, %v657_v56  ;;  %v997_v59 = vunpack.c.0.s8 %v996_v53 }
 0x1c3   : > { %1230 = vtanh.f32 %v756_v58 }
 0x1c4   : > { %v761_v62 = vpop.f32.mrb[6].mxu0  ;;  %1232 = vtanh.f32 %v758_v60  ;;  %v989_v60 = vrot.slane %v984_v55, %v1515_v36 }
 0x1c5   : > { %v762_v63 = vadd.f32 %v761_v62, %v662_v61  ;;  %v763_v0 = vpop.f32.mrb[7].mxu0  ;;  %v1223_v2 = vpop.eup %1222 }
 0x1c6   : > { %v764_v1 = vadd.f32 %v763_v0, %v662_v61  ;;  %v1225_v4 = vpop.eup %1224 }
 0x1c7   : > { %1234 = vtanh.f32 %v762_v63 }
 0x1c8   : > { %1236 = vtanh.f32 %v764_v1  ;;  %v1000_v1 = vsub.s32 %v997_v59, %v1506_v32 }
 0x1c9   : > { %v1227_v5 = vpop.eup %1226 }
 0x1ca   : > { %v1229_v6 = vpop.eup %1228  ;;  %v1127_v7 = vpack.c.bf16 %v1227_v5, %v1223_v2 }
 0x1cb   : > { %v1125_v34 = vpack.c.bf16 %v1229_v6, %v1225_v4 }
 0x1cd   : > { %1126 = vmatprep.subr.bf16.mxu1 %v1125_v34  ;;  %v1231_v8 = vpop.eup %1230 }
 0x1ce   : > { %1128 = vmatpush1.bf16.msra.mxu1 %v1127_v7  ;;  %v1233_v3 = vpop.eup %1232 }
 0x1d1   : > { %v1235_v9 = vpop.eup %1234 }
 0x1d2   : > { %v1237_v10 = vpop.eup %1236  ;;  %v1131_v11 = vpack.c.bf16 %v1235_v9, %v1231_v8 }
 0x1d3   : > { %v1129_v12 = vpack.c.bf16 %v1237_v10, %v1233_v3 }
 0x1d5   : > { %1130 = vmatprep.subr.bf16.mxu1 %v1129_v12 }
 0x1d6   : > { %1132 = vmatpush1.bf16.msra.mxu1 %v1131_v11 }
 0x1d9   : > { %1100 = vmatmul.mubr.msk.f32.vlgmr.msra.gmra.mrb[0].mxu1 %vm788_vm1, %v774_v13 }
 0x1da   : > { %865 = vmatprep.mubr.f32.mxu1 %v1316_v28 }
 0x1dd   : > { %1101 = vmatmul.mubr.msk.f32.gmra.mrb[2].mxu1 %vm788_vm1, %v775_v14 }
 0x1de   : > { %951 = vmatprep.mubr.f32.mxu1 %v1316_v28 }
 0x2ac   : > { %v861_v16 = vpop.f32.mrb[0].mxu1 }
 0x2ad   : > { %v862_v17 = vadd.f32 %v861_v16, %v781_v15  ;;  %v863_v18 = vpop.f32.mrb[1].mxu1 }
 0x2ae   : > { %v864_v19 = vadd.f32 %v863_v18, %v781_v15 }
 0x2af   : > { %1238 = vtanh.f32 %v862_v17 }
 0x2b0   : > { %v867_v21 = vpop.f32.mrb[2].mxu1  ;;  %1240 = vtanh.f32 %v864_v19 }
 0x2b1   : > { %v868_v22 = vadd.f32 %v867_v21, %v786_v20  ;;  %v869_v40 = vpop.f32.mrb[3].mxu1 }
 0x2b2   : > { %v870_v23 = vadd.f32 %v869_v40, %v786_v20 }
 0x2b3   : > { %1242 = vtanh.f32 %v868_v22 }
 0x2b4   : > { %1244 = vtanh.f32 %v870_v23 }
 0x2b9   : > { %v1239_v47 = vpop.eup %1238 }
 0x2ba   : > { %v1241_v50 = vpop.eup %1240 }
 0x2bd   : > { %v1243_v24 = vpop.eup %1242 }
 0x2be   : > { %v1245_v25 = vpop.eup %1244  ;;  %v1135_v26 = vpack.c.bf16 %v1243_v24, %v1239_v47 }
 0x2bf   : > { %v1133_v28 = vpack.c.bf16 %v1245_v25, %v1241_v50 }
 0x2c1   : > { %1134 = vmatprep.subr.bf16.mxu1 %v1133_v28 }
 0x2c2   : > { %1136 = vmatpush1.bf16.msra.mxu1 %v1135_v26 }
 0x2c5   : > { %1102 = vmatmul.mubr.msk.f32.vlgmr.msra.gmra.mrb[4].mxu1 %vm883_vm2, %v876_v27 }
 0x398   : > { %v953_v51 = vpop.f32.mrb[4].mxu1 }
 0x399   : > { %v954_v30 = vadd.f32 %v953_v51, %v881_v48  ;;  %v955_v33 = vpop.f32.mrb[5].mxu1 }
 0x39a   : > { %v956_v35 = vadd.f32 %v955_v33, %v881_v48 }
 0x39b   : > { %1246 = vtanh.f32 %v954_v30 }
 0x39c   : > { %1248 = vtanh.f32 %v956_v35 }
 0x3a5   : > { %v1247_v31 = vpop.eup %1246 }
 0x3a6   : > { %v1249_v38 = vpop.eup %1248  ;;  %v966_v39 = vmul.f32 %v1247_v31, %v964_v37 }
 0x3a7   : > { %v967_v41 = vmul.f32 %v1249_v38, %v964_v37 }
 0x3a8   : > { %v968_v42 = vrot.slane %v966_v39, 4 }
 0x3a9   : > { %v974_v43 = vrot.slane %v967_v41, 4 }
 0x3aa   : > { %v969_v44 = vadd.f32 %v968_v42, %v966_v39 }
 0x3ab   : > { %v975_v45 = vadd.f32 %v974_v43, %v967_v41 }
 0x3ac   : > { %v970_v46 = vrot.slane %v969_v44, 2 }
 0x3ad   : > { %v976_v49 = vrot.slane %v975_v45, 2 }
 0x3ae   : > { %v971_v54 = vadd.f32 %v970_v46, %v969_v44 }
 0x3af   : > { %v977_v56 = vadd.f32 %v976_v49, %v975_v45 }
 0x3b0   : > { %v972_v57 = vrot.slane %v971_v54, 1 }
 0x3b1   : > { %v978_v58 = vrot.slane %v977_v56, 1 }
 0x3b2   : > { %v973_v61 = vadd.f32 %v972_v57, %v971_v54 }
 0x3b3   : > { %v979_v62 = vadd.f32 %v978_v58, %v977_v56 }
 0x3b4   : > { %v990_v63 = vadd.f32 %v989_v60, %v973_v61 }
 0x3b5   : > { %v991_v0 = vadd.f32 %v989_v60, %v979_v62 }
 0x3b7   : > { %v994_v2 = vcombine.low %v990_v63, %v991_v0 }
 0x3b9   : > { %v1001_v4 = vrot.slane %v994_v2, %v1000_v1 }
 0x3bb   : > { %v1008_v5 = vrot.slane %v1001_v4, %v1000_v1 }
 0x3bd   : > { %1014 = vst.msk [vmem:[%s382_s15] sm:$0x3] %vm1012_vm3, %v1008_v5 }
 0x3be   : > { %1263 = shalt.err (!%p1260_p3)
}
 0x3bf   : > { %s1264_s12 = scalar_lea.hbm %s1602_s23, 32  ;;  %s1268_s17 = scalar_lea.hbm %s1655_s11, 64 }
 0x3c0   : > { %p1265_p4 = scmp.ne.s32.totalorder %s1602_s23, %s1264_s12  ;;  %p1269_p9 = scmp.lt.u32.totalorder %s1602_s23, %s1655_s11 }
 0x3c1   : > { %p1270_p10 = scmp.lt.u32.totalorder %s1268_s17, %s1264_s12  ;;  %p1272_p12 = scmp.lt.u32.totalorder %s1264_s12, %s1602_s23 }
 0x3c2   : > { %p1266_p7 = pnand %p1265_p4, %p1420_p5 }
 0x3c3   : > { %p1271_p11 = por %p1270_p10, %p1269_p9 }
 0x3c4   : > { %p1267_p8 = pneg %p1266_p7 }
 0x3c5   : > { %p1273_p13 = por %p1272_p12, %p1271_p11 }
 0x3c7   : > { %p1274_p0 = pnand %p1273_p13, %p1267_p8 }
 0x3c9   : > { %1277 = shalt.err (!%p1274_p0)
}
 0x3ca   : > { %1137 = dma.vmem_to_hbm [thread:$0]  (%p1420_p5), %s1604_s16, 32, %s1602_s23, %s1016_s25  }
 0x3cb PF: > { %p1143_p1 = scmp.ge.s32.totalorder %s1312_s22, 2  ;;  %s1042_s26 = sand.u32 1, %s1300_s19  }
 0x3cc   : > { %s1043_s30 = scalar_lea.sflag [#allocation4], %s1042_s26 }
 0x3cd   : > { %p1140_p2 = pnand %p1143_p1, %p1424_p6 }
 0x3cf   : > { %1295 = dma.done.wait (!%p1140_p2), %s1043_s30, 32  }
 0x3d0   : > { %1297 = vsyncadd (!%p1140_p2), %s1043_s30, 4294967264  ;;  %p23_p3 = scmp.ge.s32.totalorder %s1407_s24, 4   ;;  %s1658_s19 = smov %s1304_s20 }
 0x3d1   : > { %s1659_s20 = smov %s1308_s21  ;;  %s1660_s21 = smov %s1418_s27 }
 0x3d2   : > { %s1661_s22 = smov %s1407_s24  ;;  %25 = sbr.rel (!%p23_p3) target bundleno = 6 (0x6), region = 99 }
 0x3d9   :  { %1048 = vsyncpa [#allocation4], 1 }
 0x3da   :  { %1050 = vsyncpa [#allocation4 + $0x1], 1 }

</bundles_post_ra>
